<compile_context>
chip_gen: v7x
topology: tpu7x:2x2x1
jax: 0.10.0
libtpu: 0.0.40
codegen_flags: <defaults>
</compile_context>

<pallas_src>
import math

import jax
import jax.numpy as jnp
from jax import lax
from jax.experimental import pallas as pl
from jax.experimental.pallas import tpu as pltpu

# ---------------------------------------------------------------------------
# problem sizes (small, consistent with the module's forward signature)
# ---------------------------------------------------------------------------
B = 2           # batch
N = 8           # sequence length
D_CLIP = 32     # d_clip
D_SPATIAL = 64  # d_spatial_encoder
D_ATTN = 32     # d_attn (must equal D_CLIP, see NOTE above)
NUM_HEADS = 4
HEAD_DIM = D_ATTN // NUM_HEADS
LN_EPS = 1e-5
LANE = 128
NEG_INF = -1e30
_NT_DIMS = (((1,), (1,)), ((), ()))   # A @ B^T without materializing B^T


def _round_up(x, m):
    return (x + m - 1) // m * m


# ---------------------------------------------------------------------------
# packed parameter-slab layout (width = LANE; row offsets of each block)
# ---------------------------------------------------------------------------
def _slab_layout(batch, seq):
    bn = batch * seq
    g = NUM_HEADS * bn
    off = {}
    off["wq"] = 0                                   # (D_CLIP,    D_ATTN)
    off["wkv"] = off["wq"] + D_CLIP                 # (D_SPATIAL, 2*D_ATTN)
    off["wout"] = off["wkv"] + D_SPATIAL            # (D_ATTN,    D_CLIP)
    off["vec"] = off["wout"] + D_ATTN               # 9 single-row vectors
    off["mask"] = _round_up(off["vec"] + 9, 8)      # (g, g)  additive score mask
    off["pl"] = off["mask"] + g                     # (bn, g) head-average pool (left)
    off["pr"] = _round_up(off["pl"] + bn, 8)        # (g, seq) key pool (right)
    rows = _round_up(off["pr"] + g, 8)
    return off, rows, bn, g


# ---------------------------------------------------------------------------
# Pallas kernel factory (static shapes / offsets captured by closure)
# ---------------------------------------------------------------------------
def _make_kernel(batch, seq):
    off, rows, bn, g = _slab_layout(batch, seq)
    hd = HEAD_DIM
    v0 = off["vec"]

    def kernel(act_ref, p_ref, out_ref):
        act = act_ref[...]                               # (bn, 128)
        clip = act[:, 0:D_CLIP]                          # (bn, 32)
        sp = act[:, D_CLIP:D_CLIP + D_SPATIAL]           # (bn, 64)

        # ---- unpack the parameter/constant slab (static sublane slices) ----
        w_q = p_ref[off["wq"]:off["wq"] + D_CLIP, 0:D_ATTN]
        w_kv = p_ref[off["wkv"]:off["wkv"] + D_SPATIAL, 0:2 * D_ATTN]
        w_out = p_ref[off["wout"]:off["wout"] + D_ATTN, 0:D_CLIP]
        cg = p_ref[v0 + 0:v0 + 1, 0:D_CLIP]
        cb = p_ref[v0 + 1:v0 + 2, 0:D_CLIP]
        sg = p_ref[v0 + 2:v0 + 3, 0:D_SPATIAL]
        sb = p_ref[v0 + 3:v0 + 4, 0:D_SPATIAL]
        b_q = p_ref[v0 + 4:v0 + 5, 0:D_ATTN]
        b_kv = p_ref[v0 + 5:v0 + 6, 0:2 * D_ATTN]
        b_out = p_ref[v0 + 6:v0 + 7, 0:D_CLIP]
        og = p_ref[v0 + 7:v0 + 8, 0:D_CLIP]
        ob = p_ref[v0 + 8:v0 + 9, 0:D_CLIP]
        mask_bias = p_ref[off["mask"]:off["mask"] + g, 0:g]      # 0 / -1e30
        pool_l = p_ref[off["pl"]:off["pl"] + bn, 0:g]            # 1/H selector
        pool_r = p_ref[off["pr"]:off["pr"] + g, 0:seq]           # 0/1 selector

        def layer_norm(x, gamma, beta):
            mu = jnp.mean(x, axis=-1, keepdims=True)
            var = jnp.mean((x - mu) ** 2, axis=-1, keepdims=True)
            return (x - mu) * lax.rsqrt(var + LN_EPS) * gamma + beta

        clip_n = layer_norm(clip, cg, cb)
        sp_n = layer_norm(sp, sg, sb)

        # ---- fused projections (MHA in_proj & 1/sqrt(head_dim) pre-folded) --
        q2 = jnp.dot(clip_n, w_q, preferred_element_type=jnp.float32) + b_q   # (bn, 32)
        kv = jnp.dot(sp_n, w_kv, preferred_element_type=jnp.float32) + b_kv   # (bn, 64)
        k2 = kv[:, 0:D_ATTN]
        v2 = kv[:, D_ATTN:2 * D_ATTN]

        # ---- batch all heads: head-major row stacking, row = h*bn + (b*n+q) -
        q_all = jnp.concatenate(
            [q2[:, h * hd:(h + 1) * hd] for h in range(NUM_HEADS)], axis=0)    # (g, hd)
        k_all = jnp.concatenate(
            [k2[:, h * hd:(h + 1) * hd] for h in range(NUM_HEADS)], axis=0)
        v_all = jnp.concatenate(
            [v2[:, h * hd:(h + 1) * hd] for h in range(NUM_HEADS)], axis=0)

        # ONE score matmul / ONE softmax / ONE context matmul for all
        # (batch, head) pairs; cross-(batch,head) entries are masked away.
        s = lax.dot_general(q_all, k_all, _NT_DIMS,
                            preferred_element_type=jnp.float32) + mask_bias    # (g, g)
        s = s - jnp.max(s, axis=-1, keepdims=True)
        e = jnp.exp(s)
        p = e / jnp.sum(e, axis=-1, keepdims=True)   # exact softmax (matches reference)

        ctx_all = jnp.dot(p, v_all, preferred_element_type=jnp.float32)        # (g, hd)
        # lane-concat head contexts once -> ONE fused out-projection matmul
        ctx = jnp.concatenate(
            [ctx_all[h * bn:(h + 1) * bn, :] for h in range(NUM_HEADS)], axis=-1)  # (bn, 32)

        fused = jnp.dot(ctx, w_out, preferred_element_type=jnp.float32) + b_out
        fused = layer_norm(fused, og, ob)
        fused = fused + clip
        # TODO(synk): training-mode dropout(p=0.1) not implemented (inference identity).

        # head-averaged attention weights via two tiny 0/1-pooling matmuls
        attnw = jnp.dot(jnp.dot(pool_l, p, preferred_element_type=jnp.float32),
                        pool_r, preferred_element_type=jnp.float32)            # (bn, n)

        # ---- single lane-dense 128-wide store: [fused | attn | pad] ---------
        pad = jnp.zeros((bn, LANE - D_CLIP - seq), jnp.float32)
        out_ref[...] = jnp.concatenate([fused, attnw, pad], axis=-1)

    return kernel, rows


# ---------------------------------------------------------------------------
# host-side parameter fusion & single-slab packing
# ---------------------------------------------------------------------------
def fuse_and_pack_params(params, batch, seq):
    (cg, cb, sg, sb,
     wq, bq, wk, bk, wv, bv,
     wiq, biq, wik, bik, wiv, biv,
     wmo, bmo, wop, bop, og, ob) = params

    scale = 1.0 / math.sqrt(HEAD_DIM)
    # query chain: clip_query_proj -> MHA q in_proj, with 1/sqrt(dh) folded in
    w_q = (wq @ wiq) * scale                               # (D_CLIP, D_ATTN)
    b_q = (bq @ wiq + biq) * scale                         # (1, D_ATTN)
    # key / value chains, concatenated into one slab
    w_kv = jnp.concatenate([wk @ wik, wv @ wiv], axis=1)   # (D_SPATIAL, 2*D_ATTN)
    b_kv = jnp.concatenate([bk @ wik + bik, bv @ wiv + biv], axis=1)
    # output chain: MHA out_proj -> module out_proj
    w_out = wmo @ wop                                      # (D_ATTN, D_CLIP)
    b_out = bmo @ wop + bop                                # (1, D_CLIP)

    off, rows, bn, g = _slab_layout(batch, seq)
    assert g <= LANE, "mask block must fit in one 128-lane row group"

    # attention block-mask / head-pooling constants (row order = h*bn + b*n + q)
    i = jnp.arange(g)
    head_i = i // bn
    batch_i = (i % bn) // seq
    valid = (head_i[:, None] == head_i[None, :]) & (batch_i[:, None] == batch_i[None, :])
    mask_bias = jnp.where(valid, 0.0, NEG_INF).astype(jnp.float32)            # (g, g)
    r = jnp.arange(bn)
    pool_l = ((i[None, :] % bn) == r[:, None]).astype(jnp.float32) / NUM_HEADS  # (bn, g)
    kcol = jnp.arange(seq)
    pool_r = ((i[:, None] % seq) == kcol[None, :]).astype(jnp.float32)          # (g, seq)

    v0 = off["vec"]
    slab = jnp.zeros((rows, LANE), jnp.float32)
    slab = (slab
            .at[off["wq"]:off["wq"] + D_CLIP, 0:D_ATTN].set(w_q)
            .at[off["wkv"]:off["wkv"] + D_SPATIAL, 0:2 * D_ATTN].set(w_kv)
            .at[off["wout"]:off["wout"] + D_ATTN, 0:D_CLIP].set(w_out)
            .at[v0 + 0, 0:D_CLIP].set(cg[0])
            .at[v0 + 1, 0:D_CLIP].set(cb[0])
            .at[v0 + 2, 0:D_SPATIAL].set(sg[0])
            .at[v0 + 3, 0:D_SPATIAL].set(sb[0])
            .at[v0 + 4, 0:D_ATTN].set(b_q[0])
            .at[v0 + 5, 0:2 * D_ATTN].set(b_kv[0])
            .at[v0 + 6, 0:D_CLIP].set(b_out[0])
            .at[v0 + 7, 0:D_CLIP].set(og[0])
            .at[v0 + 8, 0:D_CLIP].set(ob[0])
            .at[off["mask"]:off["mask"] + g, 0:g].set(mask_bias)
            .at[off["pl"]:off["pl"] + bn, 0:g].set(pool_l)
            .at[off["pr"]:off["pr"] + g, 0:seq].set(pool_r))
    return slab


# ---------------------------------------------------------------------------
# wrapper: one pallas_call, one grid step, 2 inputs, 1 lane-dense output
# ---------------------------------------------------------------------------
def cross_attention_fusion(clip_features, spatial_features, param_slab):
    assert D_ATTN == D_CLIP, "module requires d_attn == d_clip (see NOTE)"
    b, n, dc = clip_features.shape
    _, _, ds = spatial_features.shape
    assert dc == D_CLIP and ds == D_SPATIAL
    bn = b * n

    kernel, rows = _make_kernel(b, n)
    assert param_slab.shape == (rows, LANE)

    # one lane-dense activation slab: [clip | spatial | pad] on 128 lanes
    act = jnp.concatenate(
        [clip_features.reshape(bn, dc),
         spatial_features.reshape(bn, ds),
         jnp.zeros((bn, LANE - dc - ds), jnp.float32)], axis=-1)

    out = pl.pallas_call(
        kernel,
        out_shape=jax.ShapeDtypeStruct((bn, LANE), jnp.float32),
        grid=(1,),                      # whole problem in one step on every TPU gen
        in_specs=[
            pl.BlockSpec((bn, LANE), lambda i: (0, 0)),
            pl.BlockSpec((rows, LANE), lambda i: (0, 0)),
        ],
        out_specs=pl.BlockSpec((bn, LANE), lambda i: (0, 0)),
        compiler_params=pltpu.CompilerParams(
            dimension_semantics=("arbitrary",)),
    )(act, param_slab)

    fused = out[:, :dc].reshape(b, n, dc)
    attnw = out[:, dc:dc + n].reshape(b, n, n)
    return fused, attnw


# ---------------------------------------------------------------------------
# deterministic parameter init (matches the module's __init__ shapes;
# linear weights stored as (in, out) == transposed PyTorch nn.Linear layout)
# ---------------------------------------------------------------------------
def init_params(key):
    ks = jax.random.split(key, 16)

    def w(k, shape, scale=0.2):
        return jax.random.normal(k, shape, jnp.float32) * scale

    return (
        # clip_norm (LayerNorm(d_clip)): gamma=1, beta=0 (PyTorch default)
        jnp.ones((1, D_CLIP), jnp.float32), jnp.zeros((1, D_CLIP), jnp.float32),
        # spatial_encoder_norm (LayerNorm(d_spatial))
        jnp.ones((1, D_SPATIAL), jnp.float32), jnp.zeros((1, D_SPATIAL), jnp.float32),
        # clip_query_proj: Linear(d_clip, d_attn)
        w(ks[0], (D_CLIP, D_ATTN)), w(ks[1], (1, D_ATTN)),
        # spatial_encoder_key_proj: Linear(d_spatial, d_attn)
        w(ks[2], (D_SPATIAL, D_ATTN)), w(ks[3], (1, D_ATTN)),
        # spatial_encoder_value_proj: Linear(d_spatial, d_attn)
        w(ks[4], (D_SPATIAL, D_ATTN)), w(ks[5], (1, D_ATTN)),
        # MHA in_proj (q / k / v chunks of the 3*d_attn x d_attn weight)
        w(ks[6], (D_ATTN, D_ATTN)), w(ks[7], (1, D_ATTN)),
        w(ks[8], (D_ATTN, D_ATTN)), w(ks[9], (1, D_ATTN)),
        w(ks[10], (D_ATTN, D_ATTN)), w(ks[11], (1, D_ATTN)),
        # MHA out_proj: Linear(d_attn, d_attn)
        w(ks[12], (D_ATTN, D_ATTN)), w(ks[13], (1, D_ATTN)),
        # out_proj: Linear(d_attn, d_clip)
        w(ks[14], (D_ATTN, D_CLIP)), w(ks[15], (1, D_CLIP)),
        # out_norm (LayerNorm(d_attn))
        jnp.ones((1, D_ATTN), jnp.float32), jnp.zeros((1, D_ATTN), jnp.float32),
    )


# ---------------------------------------------------------------------------
# pure-JAX reference of the PyTorch module (for the tolerance test)
# ---------------------------------------------------------------------------
def reference_forward(clip, sp, params):
    (cg, cb, sg, sb,
     wq, bq, wk, bk, wv, bv,
     wiq, biq, wik, bik, wiv, biv,
     wmo, bmo, wop, bop, og, ob) = params

    def ln(x, g, b):
        mu = jnp.mean(x, axis=-1, keepdims=True)
        var = jnp.mean((x - mu) ** 2, axis=-1, keepdims=True)
        return (x - mu) / jnp.sqrt(var + LN_EPS) * g + b

    bsz, n, _ = clip.shape
    cn = ln(clip, cg, cb)
    sn = ln(sp, sg, sb)
    q = cn @ wq + bq
    k = sn @ wk + bk
    v = sn @ wv + bv
    q = (q @ wiq + biq) * (1.0 / math.sqrt(HEAD_DIM))
    k = k @ wik + bik
    v = v @ wiv + biv
    qh = q.reshape(bsz, n, NUM_HEADS, HEAD_DIM).transpose(0, 2, 1, 3)
    kh = k.reshape(bsz, n, NUM_HEADS, HEAD_DIM).transpose(0, 2, 1, 3)
    vh = v.reshape(bsz, n, NUM_HEADS, HEAD_DIM).transpose(0, 2, 1, 3)
    s = jnp.einsum('bhqd,bhkd->bhqk', qh, kh)
    p = jax.nn.softmax(s, axis=-1)
    ctx = jnp.einsum('bhqk,bhkd->bhqd', p, vh)
    ctx = ctx.transpose(0, 2, 1, 3).reshape(bsz, n, D_ATTN)
    attn_out = ctx @ wmo + bmo
    fused = attn_out @ wop + bop
    fused = ln(fused, og, ob)
    fused = fused + clip
    # dropout(p=0.1) is identity in inference mode
    return fused, p.mean(axis=1)


if __name__ == "__main__":
    key = jax.random.PRNGKey(0)
    k_clip, k_sp, k_params = jax.random.split(key, 3)

    clip_features = jax.random.normal(k_clip, (B, N, D_CLIP), jnp.float32)
    spatial_features = jax.random.normal(k_sp, (B, N, D_SPATIAL), jnp.float32)

    params = init_params(k_params)
    param_slab = fuse_and_pack_params(params, B, N)   # one-time host-side fusion

    fused, attn_weights = cross_attention_fusion(
        clip_features, spatial_features, param_slab)
    jax.block_until_ready((fused, attn_weights))

    assert fused.shape == (B, N, D_CLIP)
    assert attn_weights.shape == (B, N, N)
    assert bool(jnp.isfinite(fused).all())
    assert bool(jnp.isfinite(attn_weights).all())

    # tolerance test vs. the pure-JAX reference (loose bounds cover the MXU's
    # bf16-pass f32 matmul rounding + fused-weight-chain reordering; a
    # structural error would be orders of magnitude larger).
    fused_ref, attn_ref = reference_forward(clip_features, spatial_features, params)
    assert bool(jnp.allclose(fused, fused_ref, atol=8e-2, rtol=8e-2)), (
        float(jnp.max(jnp.abs(fused - fused_ref))))
    assert bool(jnp.allclose(attn_weights, attn_ref, atol=2e-2, rtol=0.0)), (
        float(jnp.max(jnp.abs(attn_weights - attn_ref))))

    print("KERNEL_OK")
</pallas_src>

<mosaic_0001>
module attributes {stable_mosaic.version = 11 : i64} {
  func.func @kernel(%arg0: i32, %arg1: memref<16x128xf32, #tpu.memory_space<vmem>>, %arg2: memref<288x128xf32, #tpu.memory_space<vmem>>, %arg3: memref<16x128xf32, #tpu.memory_space<vmem>>) attributes {dimension_semantics = [#tpu.dimension_semantics<arbitrary>], iteration_bounds = array<i64: 1>, scalar_prefetch = 0 : i64, scratch_operands = 0 : i64, tpu.core_type = #tpu.core_type<tc>, window_params = [{pipeline_mode = #tpu.pipeline_mode<synchronous>, transform_indices = @transform_0, window_bounds = array<i64: 16, 128>}, {pipeline_mode = #tpu.pipeline_mode<synchronous>, transform_indices = @transform_1, window_bounds = array<i64: 288, 128>}, {pipeline_mode = #tpu.pipeline_mode<synchronous>, transform_indices = @transform_2, window_bounds = array<i64: 16, 128>}]} {
    %c0 = arith.constant 0 : index
    %c0_0 = arith.constant 0 : index
    %0 = vector.load %arg1[%c0, %c0_0] : memref<16x128xf32, #tpu.memory_space<vmem>>, vector<16x128xf32>
    %1 = vector.extract_strided_slice %0 {offsets = [0, 0], sizes = [16, 32], strides = [1, 1]} : vector<16x128xf32> to vector<16x32xf32>
    %2 = vector.extract_strided_slice %0 {offsets = [0, 32], sizes = [16, 64], strides = [1, 1]} : vector<16x128xf32> to vector<16x64xf32>
    %c0_1 = arith.constant 0 : index
    %c0_2 = arith.constant 0 : index
    %3 = vector.load %arg2[%c0_1, %c0_2] : memref<288x128xf32, #tpu.memory_space<vmem>>, vector<32x32xf32>
    %c32 = arith.constant 32 : index
    %c0_3 = arith.constant 0 : index
    %4 = vector.load %arg2[%c32, %c0_3] : memref<288x128xf32, #tpu.memory_space<vmem>>, vector<64x64xf32>
    %c96 = arith.constant 96 : index
    %c0_4 = arith.constant 0 : index
    %5 = vector.load %arg2[%c96, %c0_4] : memref<288x128xf32, #tpu.memory_space<vmem>>, vector<32x32xf32>
    %c128 = arith.constant 128 : index
    %c0_5 = arith.constant 0 : index
    %6 = vector.load %arg2[%c128, %c0_5] : memref<288x128xf32, #tpu.memory_space<vmem>>, vector<1x32xf32>
    %c129 = arith.constant 129 : index
    %c0_6 = arith.constant 0 : index
    %7 = vector.load %arg2[%c129, %c0_6] : memref<288x128xf32, #tpu.memory_space<vmem>>, vector<1x32xf32>
    %c130 = arith.constant 130 : index
    %c0_7 = arith.constant 0 : index
    %8 = vector.load %arg2[%c130, %c0_7] : memref<288x128xf32, #tpu.memory_space<vmem>>, vector<1x64xf32>
    %c131 = arith.constant 131 : index
    %c0_8 = arith.constant 0 : index
    %9 = vector.load %arg2[%c131, %c0_8] : memref<288x128xf32, #tpu.memory_space<vmem>>, vector<1x64xf32>
    %c132 = arith.constant 132 : index
    %c0_9 = arith.constant 0 : index
    %10 = vector.load %arg2[%c132, %c0_9] : memref<288x128xf32, #tpu.memory_space<vmem>>, vector<1x32xf32>
    %c133 = arith.constant 133 : index
    %c0_10 = arith.constant 0 : index
    %11 = vector.load %arg2[%c133, %c0_10] : memref<288x128xf32, #tpu.memory_space<vmem>>, vector<1x64xf32>
    %c134 = arith.constant 134 : index
    %c0_11 = arith.constant 0 : index
    %12 = vector.load %arg2[%c134, %c0_11] : memref<288x128xf32, #tpu.memory_space<vmem>>, vector<1x32xf32>
    %c135 = arith.constant 135 : index
    %c0_12 = arith.constant 0 : index
    %13 = vector.load %arg2[%c135, %c0_12] : memref<288x128xf32, #tpu.memory_space<vmem>>, vector<1x32xf32>
    %c136 = arith.constant 136 : index
    %c0_13 = arith.constant 0 : index
    %14 = vector.load %arg2[%c136, %c0_13] : memref<288x128xf32, #tpu.memory_space<vmem>>, vector<1x32xf32>
    %c144 = arith.constant 144 : index
    %c0_14 = arith.constant 0 : index
    %15 = vector.load %arg2[%c144, %c0_14] : memref<288x128xf32, #tpu.memory_space<vmem>>, vector<64x64xf32>
    %c208 = arith.constant 208 : index
    %c0_15 = arith.constant 0 : index
    %16 = vector.load %arg2[%c208, %c0_15] : memref<288x128xf32, #tpu.memory_space<vmem>>, vector<16x64xf32>
    %c224 = arith.constant 224 : index
    %c0_16 = arith.constant 0 : index
    %17 = vector.load %arg2[%c224, %c0_16] : memref<288x128xf32, #tpu.memory_space<vmem>>, vector<64x8xf32>
    %cst = arith.constant dense<0.000000e+00> : vector<16xf32>
    %18 = vector.multi_reduction <add>, %1, %cst [1] : vector<16x32xf32> to vector<16xf32>
    %19 = vector.shape_cast %18 : vector<16xf32> to vector<16x1xf32>
    %cst_17 = arith.constant 3.200000e+01 : f32
    %20 = vector.broadcast %cst_17 : f32 to vector<16x1xf32>
    %21 = arith.divf %19, %20 : vector<16x1xf32>
    %22 = vector.broadcast %21 : vector<16x1xf32> to vector<16x32xf32>
    %23 = arith.subf %1, %22 : vector<16x32xf32>
    %24 = arith.mulf %23, %23 : vector<16x32xf32>
    %cst_18 = arith.constant dense<0.000000e+00> : vector<16xf32>
    %25 = vector.multi_reduction <add>, %24, %cst_18 [1] : vector<16x32xf32> to vector<16xf32>
    %26 = vector.shape_cast %25 : vector<16xf32> to vector<16x1xf32>
    %cst_19 = arith.constant 3.200000e+01 : f32
    %27 = vector.broadcast %cst_19 : f32 to vector<16x1xf32>
    %28 = arith.divf %26, %27 : vector<16x1xf32>
    %29 = vector.broadcast %21 : vector<16x1xf32> to vector<16x32xf32>
    %30 = arith.subf %1, %29 : vector<16x32xf32>
    %cst_20 = arith.constant 9.99999974E-6 : f32
    %31 = vector.broadcast %cst_20 : f32 to vector<16x1xf32>
    %32 = arith.addf %28, %31 : vector<16x1xf32>
    %33 = math.rsqrt %32 : vector<16x1xf32>
    %34 = vector.broadcast %33 : vector<16x1xf32> to vector<16x32xf32>
    %35 = arith.mulf %30, %34 : vector<16x32xf32>
    %36 = vector.broadcast %6 : vector<1x32xf32> to vector<16x32xf32>
    %37 = arith.mulf %35, %36 : vector<16x32xf32>
    %38 = vector.broadcast %7 : vector<1x32xf32> to vector<16x32xf32>
    %39 = arith.addf %37, %38 : vector<16x32xf32>
    %cst_21 = arith.constant dense<0.000000e+00> : vector<16xf32>
    %40 = vector.multi_reduction <add>, %2, %cst_21 [1] : vector<16x64xf32> to vector<16xf32>
    %41 = vector.shape_cast %40 : vector<16xf32> to vector<16x1xf32>
    %cst_22 = arith.constant 6.400000e+01 : f32
    %42 = vector.broadcast %cst_22 : f32 to vector<16x1xf32>
    %43 = arith.divf %41, %42 : vector<16x1xf32>
    %44 = vector.broadcast %43 : vector<16x1xf32> to vector<16x64xf32>
    %45 = arith.subf %2, %44 : vector<16x64xf32>
    %46 = arith.mulf %45, %45 : vector<16x64xf32>
    %cst_23 = arith.constant dense<0.000000e+00> : vector<16xf32>
    %47 = vector.multi_reduction <add>, %46, %cst_23 [1] : vector<16x64xf32> to vector<16xf32>
    %48 = vector.shape_cast %47 : vector<16xf32> to vector<16x1xf32>
    %cst_24 = arith.constant 6.400000e+01 : f32
    %49 = vector.broadcast %cst_24 : f32 to vector<16x1xf32>
    %50 = arith.divf %48, %49 : vector<16x1xf32>
    %51 = vector.broadcast %43 : vector<16x1xf32> to vector<16x64xf32>
    %52 = arith.subf %2, %51 : vector<16x64xf32>
    %cst_25 = arith.constant 9.99999974E-6 : f32
    %53 = vector.broadcast %cst_25 : f32 to vector<16x1xf32>
    %54 = arith.addf %50, %53 : vector<16x1xf32>
    %55 = math.rsqrt %54 : vector<16x1xf32>
    %56 = vector.broadcast %55 : vector<16x1xf32> to vector<16x64xf32>
    %57 = arith.mulf %52, %56 : vector<16x64xf32>
    %58 = vector.broadcast %8 : vector<1x64xf32> to vector<16x64xf32>
    %59 = arith.mulf %57, %58 : vector<16x64xf32>
    %60 = vector.broadcast %9 : vector<1x64xf32> to vector<16x64xf32>
    %61 = arith.addf %59, %60 : vector<16x64xf32>
    %cst_26 = arith.constant dense<0.000000e+00> : vector<16x32xf32>
    %62 = tpu.matmul %39, %3, %cst_26 {dimension_numbers = #tpu.dot_dimension_numbers<[1], [0], [0], [1], [0, 0, 1, 1], [], []>} : vector<16x32xf32>, vector<32x32xf32>, vector<16x32xf32> -> vector<16x32xf32>
    %63 = vector.broadcast %10 : vector<1x32xf32> to vector<16x32xf32>
    %64 = arith.addf %62, %63 : vector<16x32xf32>
    %cst_27 = arith.constant dense<0.000000e+00> : vector<16x64xf32>
    %65 = tpu.matmul %61, %4, %cst_27 {dimension_numbers = #tpu.dot_dimension_numbers<[1], [0], [0], [1], [0, 0, 1, 1], [], []>} : vector<16x64xf32>, vector<64x64xf32>, vector<16x64xf32> -> vector<16x64xf32>
    %66 = vector.broadcast %11 : vector<1x64xf32> to vector<16x64xf32>
    %67 = arith.addf %65, %66 : vector<16x64xf32>
    %68 = vector.extract_strided_slice %67 {offsets = [0, 0], sizes = [16, 32], strides = [1, 1]} : vector<16x64xf32> to vector<16x32xf32>
    %69 = vector.extract_strided_slice %67 {offsets = [0, 32], sizes = [16, 32], strides = [1, 1]} : vector<16x64xf32> to vector<16x32xf32>
    %70 = vector.extract_strided_slice %64 {offsets = [0, 0], sizes = [16, 8], strides = [1, 1]} : vector<16x32xf32> to vector<16x8xf32>
    %71 = vector.extract_strided_slice %64 {offsets = [0, 8], sizes = [16, 8], strides = [1, 1]} : vector<16x32xf32> to vector<16x8xf32>
    %72 = vector.extract_strided_slice %64 {offsets = [0, 16], sizes = [16, 8], strides = [1, 1]} : vector<16x32xf32> to vector<16x8xf32>
    %73 = vector.extract_strided_slice %64 {offsets = [0, 24], sizes = [16, 8], strides = [1, 1]} : vector<16x32xf32> to vector<16x8xf32>
    %74 = tpu.concatenate %70, %71, %72, %73 in 0 : vector<16x8xf32>, vector<16x8xf32>, vector<16x8xf32>, vector<16x8xf32> -> vector<64x8xf32>
    %75 = vector.extract_strided_slice %68 {offsets = [0, 0], sizes = [16, 8], strides = [1, 1]} : vector<16x32xf32> to vector<16x8xf32>
    %76 = vector.extract_strided_slice %68 {offsets = [0, 8], sizes = [16, 8], strides = [1, 1]} : vector<16x32xf32> to vector<16x8xf32>
    %77 = vector.extract_strided_slice %68 {offsets = [0, 16], sizes = [16, 8], strides = [1, 1]} : vector<16x32xf32> to vector<16x8xf32>
    %78 = vector.extract_strided_slice %68 {offsets = [0, 24], sizes = [16, 8], strides = [1, 1]} : vector<16x32xf32> to vector<16x8xf32>
    %79 = tpu.concatenate %75, %76, %77, %78 in 0 : vector<16x8xf32>, vector<16x8xf32>, vector<16x8xf32>, vector<16x8xf32> -> vector<64x8xf32>
    %80 = vector.extract_strided_slice %69 {offsets = [0, 0], sizes = [16, 8], strides = [1, 1]} : vector<16x32xf32> to vector<16x8xf32>
    %81 = vector.extract_strided_slice %69 {offsets = [0, 8], sizes = [16, 8], strides = [1, 1]} : vector<16x32xf32> to vector<16x8xf32>
    %82 = vector.extract_strided_slice %69 {offsets = [0, 16], sizes = [16, 8], strides = [1, 1]} : vector<16x32xf32> to vector<16x8xf32>
    %83 = vector.extract_strided_slice %69 {offsets = [0, 24], sizes = [16, 8], strides = [1, 1]} : vector<16x32xf32> to vector<16x8xf32>
    %84 = tpu.concatenate %80, %81, %82, %83 in 0 : vector<16x8xf32>, vector<16x8xf32>, vector<16x8xf32>, vector<16x8xf32> -> vector<64x8xf32>
    %cst_28 = arith.constant dense<0.000000e+00> : vector<64x64xf32>
    %85 = tpu.matmul %74, %79, %cst_28 {dimension_numbers = #tpu.dot_dimension_numbers<[1], [1], [0], [0], [0, 0, 1, 0], [], []>} : vector<64x8xf32>, vector<64x8xf32>, vector<64x64xf32> -> vector<64x64xf32>
    %86 = arith.addf %85, %15 : vector<64x64xf32>
    %cst_29 = arith.constant dense<0xFF800000> : vector<64xf32>
    %87 = vector.multi_reduction <maximumf>, %86, %cst_29 [1] : vector<64x64xf32> to vector<64xf32>
    %88 = vector.shape_cast %87 : vector<64xf32> to vector<64x1xf32>
    %89 = vector.broadcast %88 : vector<64x1xf32> to vector<64x64xf32>
    %90 = arith.subf %86, %89 : vector<64x64xf32>
    %91 = math.exp %90 : vector<64x64xf32>
    %cst_30 = arith.constant dense<0.000000e+00> : vector<64xf32>
    %92 = vector.multi_reduction <add>, %91, %cst_30 [1] : vector<64x64xf32> to vector<64xf32>
    %93 = vector.shape_cast %92 : vector<64xf32> to vector<64x1xf32>
    %94 = vector.broadcast %93 : vector<64x1xf32> to vector<64x64xf32>
    %95 = arith.divf %91, %94 : vector<64x64xf32>
    %cst_31 = arith.constant dense<0.000000e+00> : vector<64x8xf32>
    %96 = tpu.matmul %95, %84, %cst_31 {dimension_numbers = #tpu.dot_dimension_numbers<[1], [0], [0], [1], [0, 0, 1, 1], [], []>} : vector<64x64xf32>, vector<64x8xf32>, vector<64x8xf32> -> vector<64x8xf32>
    %97 = vector.extract_strided_slice %96 {offsets = [0, 0], sizes = [16, 8], strides = [1, 1]} : vector<64x8xf32> to vector<16x8xf32>
    %98 = vector.extract_strided_slice %96 {offsets = [16, 0], sizes = [16, 8], strides = [1, 1]} : vector<64x8xf32> to vector<16x8xf32>
    %99 = vector.extract_strided_slice %96 {offsets = [32, 0], sizes = [16, 8], strides = [1, 1]} : vector<64x8xf32> to vector<16x8xf32>
    %100 = vector.extract_strided_slice %96 {offsets = [48, 0], sizes = [16, 8], strides = [1, 1]} : vector<64x8xf32> to vector<16x8xf32>
    %101 = tpu.concatenate %97, %98, %99, %100 in 1 : vector<16x8xf32>, vector<16x8xf32>, vector<16x8xf32>, vector<16x8xf32> -> vector<16x32xf32>
    %cst_32 = arith.constant dense<0.000000e+00> : vector<16x32xf32>
    %102 = tpu.matmul %101, %5, %cst_32 {dimension_numbers = #tpu.dot_dimension_numbers<[1], [0], [0], [1], [0, 0, 1, 1], [], []>} : vector<16x32xf32>, vector<32x32xf32>, vector<16x32xf32> -> vector<16x32xf32>
    %103 = vector.broadcast %12 : vector<1x32xf32> to vector<16x32xf32>
    %104 = arith.addf %102, %103 : vector<16x32xf32>
    %cst_33 = arith.constant dense<0.000000e+00> : vector<16xf32>
    %105 = vector.multi_reduction <add>, %104, %cst_33 [1] : vector<16x32xf32> to vector<16xf32>
    %106 = vector.shape_cast %105 : vector<16xf32> to vector<16x1xf32>
    %cst_34 = arith.constant 3.200000e+01 : f32
    %107 = vector.broadcast %cst_34 : f32 to vector<16x1xf32>
    %108 = arith.divf %106, %107 : vector<16x1xf32>
    %109 = vector.broadcast %108 : vector<16x1xf32> to vector<16x32xf32>
    %110 = arith.subf %104, %109 : vector<16x32xf32>
    %111 = arith.mulf %110, %110 : vector<16x32xf32>
    %cst_35 = arith.constant dense<0.000000e+00> : vector<16xf32>
    %112 = vector.multi_reduction <add>, %111, %cst_35 [1] : vector<16x32xf32> to vector<16xf32>
    %113 = vector.shape_cast %112 : vector<16xf32> to vector<16x1xf32>
    %cst_36 = arith.constant 3.200000e+01 : f32
    %114 = vector.broadcast %cst_36 : f32 to vector<16x1xf32>
    %115 = arith.divf %113, %114 : vector<16x1xf32>
    %116 = vector.broadcast %108 : vector<16x1xf32> to vector<16x32xf32>
    %117 = arith.subf %104, %116 : vector<16x32xf32>
    %cst_37 = arith.constant 9.99999974E-6 : f32
    %118 = vector.broadcast %cst_37 : f32 to vector<16x1xf32>
    %119 = arith.addf %115, %118 : vector<16x1xf32>
    %120 = math.rsqrt %119 : vector<16x1xf32>
    %121 = vector.broadcast %120 : vector<16x1xf32> to vector<16x32xf32>
    %122 = arith.mulf %117, %121 : vector<16x32xf32>
    %123 = vector.broadcast %13 : vector<1x32xf32> to vector<16x32xf32>
    %124 = arith.mulf %122, %123 : vector<16x32xf32>
    %125 = vector.broadcast %14 : vector<1x32xf32> to vector<16x32xf32>
    %126 = arith.addf %124, %125 : vector<16x32xf32>
    %127 = arith.addf %126, %1 : vector<16x32xf32>
    %cst_38 = arith.constant dense<0.000000e+00> : vector<16x64xf32>
    %128 = tpu.matmul %16, %95, %cst_38 {dimension_numbers = #tpu.dot_dimension_numbers<[1], [0], [0], [1], [0, 0, 1, 1], [], []>} : vector<16x64xf32>, vector<64x64xf32>, vector<16x64xf32> -> vector<16x64xf32>
    %cst_39 = arith.constant dense<0.000000e+00> : vector<16x8xf32>
    %129 = tpu.matmul %128, %17, %cst_39 {dimension_numbers = #tpu.dot_dimension_numbers<[1], [0], [0], [1], [0, 0, 1, 1], [], []>} : vector<16x64xf32>, vector<64x8xf32>, vector<16x8xf32> -> vector<16x8xf32>
    %cst_40 = arith.constant 0.000000e+00 : f32
    %130 = vector.broadcast %cst_40 : f32 to vector<16x88xf32>
    %131 = tpu.concatenate %127, %129, %130 in 1 : vector<16x32xf32>, vector<16x8xf32>, vector<16x88xf32> -> vector<16x128xf32>
    %c0_41 = arith.constant 0 : index
    %c0_42 = arith.constant 0 : index
    %132 = vector.load %arg3[%c0_41, %c0_42] : memref<16x128xf32, #tpu.memory_space<vmem>>, vector<16x128xf32>
    tpu.vector_store %arg3[%c0_41, %c0_42], %131 {strides = array<i32>} : memref<16x128xf32, #tpu.memory_space<vmem>>, vector<16x128xf32>,
    return
  }
  func.func @transform_0(%arg0: i32) -> (i32, i32) {
    %c0_i32 = arith.constant 0 : i32
    %c0_i32_0 = arith.constant 0 : i32
    %c0_i32_1 = arith.constant 0 : i32
    return %c0_i32, %c0_i32_0 : i32, i32
  }
  func.func @transform_1(%arg0: i32) -> (i32, i32) {
    %c0_i32 = arith.constant 0 : i32
    %c0_i32_0 = arith.constant 0 : i32
    %c0_i32_1 = arith.constant 0 : i32
    return %c0_i32, %c0_i32_0 : i32, i32
  }
  func.func @transform_2(%arg0: i32) -> (i32, i32) {
    %c0_i32 = arith.constant 0 : i32
    %c0_i32_0 = arith.constant 0 : i32
    %c0_i32_1 = arith.constant 0 : i32
    return %c0_i32, %c0_i32_0 : i32, i32
  }
}

</mosaic_0001>

<bundles_post_ra>
// kernel: tpu_custom_call.1
= control target key start
LH: loop header
LB: loop body
LE: loop exit
PB: predicated region body
PF: predicated region fallthrough
CT: control target
= control target key end

     0   :  { %7 = vsyncpa [#allocation3], 0  ;;  %s1868_s0 = inlined_call_operand.hbm [shape: f32[16,128], index: 0, kind: input, shape index: {}]   ;;  %s1869_s1 = inlined_call_operand.hbm [shape: f32[288,128], index: 1, kind: input, shape index: {}]   ;;  %s1870_s2 = inlined_call_operand.hbm [shape: f32[16,128], index: 2, kind: output, shape index: {}]  }
   0x1   :  { %8 = vsyncpa [#allocation6], 0 }
   0x2   :  { %9 = vsyncpa [#allocation4], 0  ;;  %s1641_s9 = smov [#allocation2]   ;;  %s1569_s13 = scalar_lea.hbm %s1868_s0, 256 }
   0x3   :  { %s15_s10 = sshll.u32 %s1641_s9, 4  ;;  %p1570_p0 = scmp.ne.s32.totalorder %s1868_s0, %s1569_s13  ;;  %s16_s10 = int_to_ptr.vmem [resolvable:$true] %s15_s10 }
   0x4   :  { %p1573_p1 = scmp.lt.u32.totalorder %s1569_s13, %s1868_s0 }
   0x6   :  { %p1575_p2 = pnand %p1573_p1, %p1570_p0 }
   0x8   :  { %1578 = shalt.err (!%p1575_p2)
}
   0x9   :  { %s1579_s18 = scalar_lea.vmem %s16_s10, 256  ;;  %p1584_p4 = scmp.lt.s32.totalorder %s16_s10, %s16_s10 }
   0xa   :  { %p1580_p3 = scmp.ne.s32.totalorder %s16_s10, %s1579_s18  ;;  %p1585_p5 = scmp.lt.s32.totalorder %s1579_s18, %s1579_s18 }
   0xc   :  { %p1586_p6 = por %p1585_p5, %p1584_p4 }
   0xe   :  { %p1587_p7 = pnand %p1586_p6, %p1580_p3 }
  0x10   :  { %1590 = shalt.err (!%p1587_p7)
}
  0x11   :  { %s1642_s19 = smov 128   ;;  %s1643_s20 = smov 8  }
  0x12   :  { %21 = dma.hbm_to_vmem [thread:$0]  %s1868_s0, 256, %s16_s10, [#allocation3], %s1642_s19, %s1642_s19, %s1643_s20  }
  0x13   :  { %s1644_s23 = smov [#allocation5]   ;;  %s1591_s27 = scalar_lea.hbm %s1869_s1, 4608 }
  0x14   :  { %s27_s24 = sshll.u32 %s1644_s23, 4  ;;  %p1592_p8 = scmp.ne.s32.totalorder %s1869_s1, %s1591_s27  ;;  %s28_s24 = int_to_ptr.vmem [resolvable:$true] %s27_s24 }
  0x15   :  { %p1595_p9 = scmp.lt.u32.totalorder %s1591_s27, %s1869_s1 }
  0x17   :  { %p1597_p10 = pnand %p1595_p9, %p1592_p8 }
  0x19   :  { %1600 = shalt.err (!%p1597_p10)
}
  0x1a   :  { %s1601_s4 = scalar_lea.vmem %s28_s24, 4608  ;;  %p1606_p12 = scmp.lt.s32.totalorder %s28_s24, %s28_s24 }
  0x1b   :  { %p1602_p11 = scmp.ne.s32.totalorder %s28_s24, %s1601_s4  ;;  %p1607_p13 = scmp.lt.s32.totalorder %s1601_s4, %s1601_s4 }
  0x1d   :  { %p1608_p0 = por %p1607_p13, %p1606_p12 }
  0x1f   :  { %p1609_p1 = pnand %p1608_p0, %p1602_p11 }
  0x21   :  { %1612 = shalt.err (!%p1609_p1)
}
  0x22   :  { %33 = dma.hbm_to_vmem [thread:$0]  %s1869_s1, 4608, %s28_s24, [#allocation6], %s1642_s19, %s1642_s19, %s1643_s20  }
  0x23   :  { %1635 = dma.done.wait [#allocation3], 256  }
  0x24   :  { %1636 = vsyncadd [#allocation3], 4294967040 }
  0x25   :  { %1637 = dma.done.wait [#allocation6], 4608  }
  0x26   :  { %1638 = vsyncadd [#allocation6], 4294962688  ;;  %v1698_v0 = vld [vmem:[#allocation2] sm:$0xff]  ;;  %s1645_s6 = smov 96   ;;  %v1702_v1 = vld [vmem:[#allocation2 + $0x8] sm:$0xff]  ;;  %vm133_vm0 = vcmask 523264  }
  0x27   :  { %127 = vrot.lane.b32.xlu0 %v1698_v0, %s1645_s6  ;;  %vm85_vm1 = vcmask 261120   ;;  %v1125_v20 = vld [vmem:[#allocation5 + $0x83] ss:$0 sm:$0xff]  ;;  %v1124_v21 = vld [vmem:[#allocation5 + $0x82] ss:$0 sm:$0xff]  ;;  %s1646_s1 = smov 32  }
  0x28   :  { %v86_v14 = vsel %vm85_vm1, %v1698_v0, 0.0  ;;  %v89_v15 = vsel %vm85_vm1, %v1702_v1, 0.0  ;;  %v42_v32 = vld [vmem:[#allocation5] sm:$0xff]  ;;  %v43_v33 = vld [vmem:[#allocation5 + $0x8] sm:$0xff]  ;;  %v44_v34 = vld [vmem:[#allocation5 + $0x10] sm:$0xff]  ;;  %vm391_vm2 = vcmask 64512  }
  0x29   :  { %v1374_v35 = vpack.c.bf16 %v43_v33, %v42_v32  ;;  %v45_v36 = vld [vmem:[#allocation5 + $0x18] sm:$0xff]  ;;  %v46_v38 = vld [vmem:[#allocation5 + $0x20] sm:$0xff]  ;;  %v47_v39 = vld [vmem:[#allocation5 + $0x28] sm:$0xff]  ;;  %s1647_s7 = smov 104   ;;  %s1648_s8 = smov 120   ;;  %vm796_vm4 = vcmask 130048  }
  0x2a   :  { %v1378_v37 = vpack.c.bf16 %v45_v36, %v44_v34  ;;  %v48_v40 = vld [vmem:[#allocation5 + $0x30] sm:$0xff]  ;;  %v1382_v41 = vpack.c.bf16 %v47_v39, %v46_v38  ;;  %v49_v42 = vld [vmem:[#allocation5 + $0x38] sm:$0xff]  ;;  %v50_v44 = vld [vmem:[#allocation5 + $0x40] sm:$0xff]  ;;  %s1649_s9 = smov 112   ;;  %s1650_s10 = smov 16   ;;  %vm799_vm5 = vcmask 195584  }
  0x2b   :  { %129 = vrot.lane.b32.xlu0 %v1702_v1, %s1645_s6  ;;  %1375 = vmatprep.subr.bf16.mxu0 %v1374_v35  ;;  %v1386_v43 = vpack.c.bf16 %v49_v42, %v48_v40  ;;  %v51_v45 = vld [vmem:[#allocation5 + $0x48] sm:$0xff]  ;;  %v52_v52 = vld [vmem:[#allocation5 + $0x50] sm:$0xff]  ;;  %v53_v53 = vld [vmem:[#allocation5 + $0x58] sm:$0xff]  ;;  %s1651_s11 = smov 24   ;;  %vm1099_vm6 = vcmask 326656   ;;  %s1652_s12 = smov [#allocation7]  }
  0x2c   :  { %1377 = vmatpush3.bf16.msra.mxu0 %v1374_v35  ;;  %1383 = vmatprep.subr.bf16.mxu1 %v1382_v41  ;;  %v1390_v46 = vpack.c.bf16 %v51_v45, %v50_v44  ;;  %v1394_v55 = vpack.c.bf16 %v53_v53, %v52_v52  ;;  %vm1755_vm3 = vmpackc.low %vm391_vm2, %vm391_vm2  ;;  %v68_v53 = vld [vmem:[#allocation5 + $0x98] sm:$0xff]  ;;  %s1109_s13 = sshll.u32 %s1652_s12, 4  ;;  %s1110_s13 = int_to_ptr.vmem [resolvable:$true] %s1109_s13 }
  0x2d   :  { %1379 = vmatprep.subr.bf16.mxu0 %v1378_v37  ;;  %1385 = vmatpush3.bf16.msra.mxu1 %v1382_v41  ;;  %s1613_s14 = scalar_lea.vmem %s1110_s13, 256  ;;  %p1618_p3 = scmp.lt.s32.totalorder %s1110_s13, %s1110_s13 }
  0x2e   :  { %1387 = vmatprep.subr.bf16.mxu1 %v1386_v43  ;;  %p1614_p2 = scmp.ne.s32.totalorder %s1110_s13, %s1613_s14  ;;  %p1619_p4 = scmp.lt.s32.totalorder %s1613_s14, %s1613_s14 }
  0x30   :  { %1381 = vmatpush3.bf16.msra.mxu0 %v1378_v37  ;;  %p1620_p5 = por %p1619_p4, %p1618_p3 }
  0x31   :  { %1389 = vmatpush3.bf16.msra.mxu1 %v1386_v43 }
  0x32   :  { %1391 = vmatprep.subr.bf16.mxu1 %v1390_v46  ;;  %p1621_p6 = pnand %p1620_p5, %p1614_p2 }
  0x35   :  { %1393 = vmatpush3.bf16.msra.mxu1 %v1390_v46 }
  0x36   :  { %1395 = vmatprep.subr.bf16.mxu1 %v1394_v55 }
  0x39   :  { %1397 = vmatpush3.bf16.msra.mxu1 %v1394_v55 }
  0x99   :  { %v128_v2 = vpop.permute.xlu0 %127 }
  0x9a   :  { %v134_v3 = vsel %vm133_vm0, %v128_v2, 0.0 }
  0x9b   :  { %135 = vadd.xlane.f32.xlu1 %v134_v3 }
  0x9d   :  { %v130_v4 = vpop.permute.xlu0 %129 }
  0x9e   :  { %v137_v5 = vsel %vm133_vm0, %v130_v4, 0.0 }
  0x9f   :  { %138 = vadd.xlane.f32.xlu1 %v137_v5 }
 0x128   :  { %v136_v6 = vpop.xlane.xlu1 %135 }
 0x129   :  { %v141_v7 = vmul.f32 0.015625, %v136_v6 }
 0x12b   :  { %v1709_v8 = vsub.f32 %v1698_v0, %v141_v7 }
 0x12c   :  { %v139_v9 = vpop.xlane.xlu1 %138 }
 0x12d   :  { %v142_v10 = vmul.f32 0.015625, %v139_v9  ;;  %v145_v11 = vmul.f32 %v1709_v8, %v1709_v8 }
 0x12f   :  { %v1714_v12 = vsub.f32 %v1702_v1, %v142_v10  ;;  %149 = vrot.lane.b32.xlu0 %v145_v11, %s1645_s6  ;;  %v1122_v11 = vld [vmem:[#allocation5 + $0x80] ss:$0 sm:$0xff] }
 0x131   :  { %v146_v13 = vmul.f32 %v1714_v12, %v1714_v12 }
 0x133   :  { %151 = vrot.lane.b32.xlu1 %v146_v13, %s1645_s6 }
 0x14e   :  { %87 = vadd.xlane.f32.xlu0 %v86_v14 }
 0x152   :  { %90 = vadd.xlane.f32.xlu0 %v89_v15 }
 0x1a1   :  { %v150_v16 = vpop.permute.xlu0 %149 }
 0x1a2   :  { %v155_v17 = vsel %vm133_vm0, %v150_v16, 0.0 }
 0x1a3   :  { %156 = vadd.xlane.f32.xlu0 %v155_v17 }
 0x1a5   :  { %v152_v18 = vpop.permute.xlu1 %151 }
 0x1a6   :  { %v158_v19 = vsel %vm133_vm0, %v152_v18, 0.0 }
 0x1a7   :  { %159 = vadd.xlane.f32.xlu1 %v158_v19 }
 0x1b8   :  { %184 = vrot.lane.b32.xlu1 %v1125_v20, %s1646_s1 }
 0x1b9   :  { %174 = vrot.lane.b32.xlu0 %v1124_v21, %s1646_s1 }
 0x1db   :  { %v88_v22 = vpop.xlane.xlu0 %87 }
 0x1dc   :  { %v93_v23 = vmul.f32 0.03125, %v88_v22  ;;  %v1126_v22 = vld [vmem:[#allocation5 + $0x84] ss:$0 sm:$0xff] }
 0x1de   :  { %v1729_v24 = vsub.f32 %v1698_v0, %v93_v23 }
 0x1df   :  { %v91_v25 = vpop.xlane.xlu0 %90 }
 0x1e0   :  { %v94_v26 = vmul.f32 0.03125, %v91_v25  ;;  %v97_v27 = vmul.f32 %v1729_v24, %v1729_v24 }
 0x1e2   :  { %v1734_v28 = vsub.f32 %v1702_v1, %v94_v26  ;;  %v99_v29 = vsel %vm85_vm1, %v97_v27, 0.0  ;;  %v1129_v26 = vld [vmem:[#allocation5 + $0x85] ss:$0 sm:$0xff] }
 0x1e3   :  { %100 = vadd.xlane.f32.xlu0 %v99_v29 }
 0x1e4   :  { %v98_v30 = vmul.f32 %v1734_v28, %v1734_v28 }
 0x1e6   :  { %v102_v31 = vsel %vm85_vm1, %v98_v30, 0.0 }
 0x1e7   :  { %103 = vadd.xlane.f32.xlu1 %v102_v31 }
 0x230   :  { %v157_v47 = vpop.xlane.xlu0 %156 }
 0x231   :  { %v161_v48 = vmul.f32 0.015625, %v157_v47 }
 0x233   :  { %v163_v49 = vadd.f32 1e-05, %v161_v48 }
 0x234   :  { %v160_v50 = vpop.xlane.xlu1 %159  ;;  %v175_v57 = vpop.permute.xlu0 %174 }
 0x235   :  { %1525 = vrsqrt.f32 %v163_v49  ;;  %v162_v51 = vmul.f32 0.015625, %v160_v50 }
 0x237   :  { %v164_v54 = vadd.f32 1e-05, %v162_v51 }
 0x238   :  { %v185_v59 = vpop.permute.xlu1 %184 }
 0x239   :  { %1527 = vrsqrt.f32 %v164_v54  ;;  %v67_v54 = vld [vmem:[#allocation5 + $0x90] sm:$0xff] }
 0x23f   :  { %v1526_v56 = vpop.eup %1525 }
 0x240   :  { %v167_v58 = vmul.f32 %v1526_v56, %v1709_v8 }
 0x242   :  { %v177_v60 = vmul.f32 %v175_v57, %v167_v58 }
 0x243   :  { %v1528_v61 = vpop.eup %1527 }
 0x244   :  { %v168_v62 = vmul.f32 %v1528_v61, %v1714_v12  ;;  %v187_v63 = vadd.f32 %v185_v59, %v177_v60  ;;  %v1123_v12 = vld [vmem:[#allocation5 + $0x81] ss:$0 sm:$0xff] }
 0x245   :  { %v69_v60 = vld [vmem:[#allocation5 + $0xa0] sm:$0xff] }
 0x246   :  { %v178_v2 = vmul.f32 %v175_v57, %v168_v62  ;;  %280 = vrot.lane.b32.xlu0 %v187_v63, %s1645_s6  ;;  %v70_v63 = vld [vmem:[#allocation5 + $0xa8] sm:$0xff] }
 0x248   :  { %v188_v3 = vadd.f32 %v185_v59, %v178_v2 }
 0x24a   :  { %282 = vrot.lane.b32.xlu1 %v188_v3, %s1645_s6 }
 0x270   :  { %v101_v4 = vpop.xlane.xlu0 %100 }
 0x271   :  { %v105_v5 = vmul.f32 0.03125, %v101_v4  ;;  %v71_v4 = vld [vmem:[#allocation5 + $0xb0] sm:$0xff] }
 0x273   :  { %v107_v6 = vadd.f32 1e-05, %v105_v5 }
 0x274   :  { %v104_v7 = vpop.xlane.xlu1 %103 }
 0x275   :  { %1529 = vrsqrt.f32 %v107_v6  ;;  %v106_v9 = vmul.f32 0.03125, %v104_v7 }
 0x277   :  { %v108_v10 = vadd.f32 1e-05, %v106_v9  ;;  %v72_v9 = vld [vmem:[#allocation5 + $0xb8] sm:$0xff] }
 0x279   :  { %1531 = vrsqrt.f32 %v108_v10 }
 0x27f   :  { %v1530_v8 = vpop.eup %1529 }
 0x280   :  { %v111_v13 = vmul.f32 %v1530_v8, %v1729_v24 }
 0x282   :  { %v117_v14 = vmul.f32 %v1122_v11, %v111_v13 }
 0x283   :  { %v1532_v15 = vpop.eup %1531 }
 0x284   :  { %v112_v16 = vmul.f32 %v1532_v15, %v1734_v28  ;;  %v123_v17 = vadd.f32 %v1123_v12, %v117_v14 }
 0x286   :  { %v118_v18 = vmul.f32 %v1122_v11, %v112_v16  ;;  %1247 = vmatprep.mubr.msk.f32.mxu0 %vm85_vm1, %v123_v17  ;;  %v73_v11 = vld [vmem:[#allocation5 + $0xc0] sm:$0xff]  ;;  %v74_v16 = vld [vmem:[#allocation5 + $0xc8] sm:$0xff] }
 0x288   :  { %v124_v19 = vadd.f32 %v1123_v12, %v118_v18 }
 0x28a   :  { %1248 = vmatmul.mubr.msk.f32.vlgmr.msra.gmra.mrb[0].mxu0 %vm85_vm1, %v124_v19 }
 0x2b8   :  { %v281_v20 = vpop.permute.xlu0 %280 }
 0x2b9   :  { %1266 = vmatprep.mubr.msk.f32.mxu1 %vm133_vm0, %v281_v20 }
 0x2bc   :  { %v283_v21 = vpop.permute.xlu1 %282 }
 0x2bd   :  { %1267 = vmatmul.mubr.msk.f32.vlgmr.msra.gmra.mrb[0].mxu1 %vm133_vm0, %v283_v21 }
 0x35d   :  { %v1249_v23 = vpop.f32.mrb[0].mxu0 }
 0x35e   :  { %v265_v24 = vpop.f32.mrb[1].mxu0  ;;  %v271_v34 = vadd.f32 %v1249_v23, %v1126_v22 }
 0x35f   :  { %v266_v25 = vadd.f32 %v1126_v22, %v265_v24 }
 0x361   :  { %1285 = vmatprep.mubr.msk.f32.mxu0 %vm391_vm2, %v266_v25 }
 0x390   :  { %v1268_v27 = vpop.f32.mrb[0].mxu1 }
 0x391   :  { %v360_v28 = vadd.f32 %v1268_v27, %v1129_v26  ;;  %v354_v29 = vpop.f32.mrb[1].mxu1 }
 0x392   :  { %v355_v30 = vadd.f32 %v1129_v26, %v354_v29 }
 0x394   :  { %v1751_v31 = vpack.i.bf16 %v360_v28, %v355_v30  ;;  %v1398_v32 = vpack.c.bf16 %v360_v28, %v355_v30 }
 0x396   :  { %1501 = vrot.lane.b32.xlu1 %v1751_v31, %s1647_s7  ;;  %1491 = vrot.lane.b32.xlu0 %v1751_v31, %s1648_s8 }
 0x397   :  { %1400 = vmatprep.subr.msk.bf16.mxu0 %vm1755_vm3, %v1398_v32 }
 0x398   :  { %1403 = vmatpush3.bf16.xpose.msk.msra.mxu0 %vm1755_vm3, %v1398_v32 }
 0x39a   :  { %367 = vrot.lane.b32.xlu1 %v271_v34, %s1648_s8  ;;  %1496 = vrot.lane.b32.xlu0 %v1751_v31, %s1649_s9 }
 0x39e   :  { %371 = vrot.lane.b32.xlu1 %v271_v34, %s1649_s9  ;;  %365 = vrot.lane.b32.xlu0 %v266_v25, %s1648_s8 }
 0x3a2   :  { %375 = vrot.lane.b32.xlu1 %v271_v34, %s1647_s7  ;;  %369 = vrot.lane.b32.xlu0 %v266_v25, %s1649_s9 }
 0x3a6   :  { %373 = vrot.lane.b32.xlu0 %v266_v25, %s1647_s7 }
 0x408   :  { %v1766_v35 = vpop.permute.xlu1 %1501  ;;  %v1768_v36 = vpop.permute.xlu0 %1491 }
 0x409   :  { %v1504_v37 = vunpack.i.h.bf16 %v1766_v35  ;;  %v1503_v38 = vunpack.i.l.bf16 %v1766_v35  ;;  %v1494_v39 = vunpack.i.h.bf16 %v1768_v36  ;;  %v1493_v40 = vunpack.i.l.bf16 %v1768_v36 }
 0x40b   :  { %v1404_v41 = vpack.c.bf16 %v1494_v39, %v1493_v40  ;;  %v1416_v46 = vpack.c.bf16 %v1504_v37, %v1503_v38 }
 0x40c   :  { %v1774_v42 = vpop.permute.xlu0 %1496  ;;  %v368_v48 = vpop.permute.xlu1 %367 }
 0x40d   :  { %v1499_v43 = vunpack.i.h.bf16 %v1774_v42  ;;  %v1498_v44 = vunpack.i.l.bf16 %v1774_v42  ;;  %1406 = vmatprep.subr.msk.bf16.mxu0 %vm1755_vm3, %v1404_v41 }
 0x40e   :  { %1409 = vmatpush3.bf16.xpose.msk.msra.mxu0 %vm1755_vm3, %v1404_v41 }
 0x40f   :  { %v1410_v45 = vpack.c.bf16 %v1499_v43, %v1498_v44 }
 0x410   :  { %v366_v47 = vpop.permute.xlu0 %365  ;;  %v372_v50 = vpop.permute.xlu1 %371 }
 0x411   :  { %1412 = vmatprep.subr.msk.bf16.mxu0 %vm1755_vm3, %v1410_v45 }
 0x414   :  { %v370_v49 = vpop.permute.xlu0 %369  ;;  %v376_v52 = vpop.permute.xlu1 %375 }
 0x416   :  { %1415 = vmatpush3.bf16.xpose.msk.msra.mxu0 %vm1755_vm3, %v1410_v45 }
 0x417   :  { %1418 = vmatprep.subr.msk.bf16.mxu0 %vm1755_vm3, %v1416_v46 }
 0x418   :  { %v374_v51 = vpop.permute.xlu0 %373 }
 0x41e   :  { %1421 = vmatpush3.bf16.xpose.msk.msra.mxu0 %vm1755_vm3, %v1416_v46 }
 0x425   :  { %1286 = vmatmul.mubr.msk.f32.vlgmr.msra.gmra.mrb[2].mxu0 %vm391_vm2, %v271_v34 }
 0x426   :  { %1288 = vmatprep.mubr.msk.f32.mxu0 %vm391_vm2, %v366_v47 }
 0x429   :  { %1289 = vmatmul.mubr.msk.f32.gmra.mrb[4].mxu0 %vm391_vm2, %v368_v48 }
 0x42a   :  { %1291 = vmatprep.mubr.msk.f32.mxu0 %vm391_vm2, %v370_v49 }
 0x42d   :  { %1292 = vmatmul.mubr.msk.f32.gmra.mrb[6].mxu0 %vm391_vm2, %v372_v50 }
 0x42e   :  { %1294 = vmatprep.mubr.msk.f32.mxu0 %vm391_vm2, %v374_v51 }
 0x431   :  { %1295 = vmatmul.mubr.msk.f32.gmra.mrb[8].mxu0 %vm391_vm2, %v376_v52 }
 0x4f8   :  { %v1287_v55 = vpop.f32.mrb[2].mxu0 }
 0x4f9   :  { %v496_v56 = vadd.f32 %v1287_v55, %v68_v53  ;;  %v490_v57 = vpop.f32.mrb[3].mxu0 }
 0x4fa   :  { %v491_v58 = vadd.f32 %v490_v57, %v67_v54 }
 0x4fb   :  { %v532_v59 = vsel %vm133_vm0, %v496_v56, -inf }
 0x4fc   :  { %533 = vmax.xlane.f32.xlu1 %v532_v59  ;;  %v1290_v61 = vpop.f32.mrb[4].mxu0  ;;  %v529_v62 = vsel %vm133_vm0, %v491_v58, -inf }
 0x4fd   :  { %v500_v2 = vpop.f32.mrb[5].mxu0  ;;  %530 = vmax.xlane.f32.xlu0 %v529_v62  ;;  %v506_v5 = vadd.f32 %v1290_v61, %v70_v63 }
 0x4fe   :  { %v501_v3 = vadd.f32 %v500_v2, %v69_v60 }
 0x4ff   :  { %v538_v15 = vsel %vm133_vm0, %v506_v5, -inf }
 0x500   :  { %v1293_v6 = vpop.f32.mrb[6].mxu0  ;;  %v535_v7 = vsel %vm133_vm0, %v501_v3, -inf }
 0x501   :  { %v510_v10 = vpop.f32.mrb[7].mxu0  ;;  %536 = vmax.xlane.f32.xlu0 %v535_v7  ;;  %v516_v13 = vadd.f32 %v1293_v6, %v72_v9 }
 0x502   :  { %v511_v8 = vadd.f32 %v510_v10, %v71_v4 }
 0x503   :  { %v544_v21 = vsel %vm133_vm0, %v516_v13, -inf }
 0x504   :  { %v1296_v12 = vpop.f32.mrb[8].mxu0  ;;  %v541_v14 = vsel %vm133_vm0, %v511_v8, -inf }
 0x505   :  { %v520_v17 = vpop.f32.mrb[9].mxu0  ;;  %542 = vmax.xlane.f32.xlu1 %v541_v14  ;;  %539 = vmax.xlane.f32.xlu0 %v538_v15  ;;  %v526_v19 = vadd.f32 %v1296_v12, %v74_v16 }
 0x506   :  { %v521_v18 = vadd.f32 %v520_v17, %v73_v11 }
 0x507   :  { %v550_v22 = vsel %vm133_vm0, %v526_v19, -inf }
 0x508   :  { %v547_v20 = vsel %vm133_vm0, %v521_v18, -inf }
 0x509   :  { %548 = vmax.xlane.f32.xlu1 %v547_v20  ;;  %545 = vmax.xlane.f32.xlu0 %v544_v21 }
 0x50d   :  { %551 = vmax.xlane.f32.xlu0 %v550_v22 }
 0x51a   :  { %1506 = vrot.lane.b32.xlu1 %v1751_v31, %s1645_s6 }
 0x589   :  { %v534_v23 = vpop.xlane.xlu1 %533 }
 0x58a   :  { %v554_v24 = vsub.f32 %v496_v56, %v534_v23  ;;  %v531_v25 = vpop.xlane.xlu0 %530 }
 0x58b   :  { %v553_v26 = vsub.f32 %v491_v58, %v531_v25 }
 0x58c   :  { %v563_v27 = vmul.f32 1.442695, %v554_v24 }
 0x58d   :  { %v561_v28 = vmul.f32 1.442695, %v553_v26 }
 0x58e   :  { %1533 = vpow2.f32 %v563_v27  ;;  %v537_v29 = vpop.xlane.xlu0 %536 }
 0x58f   :  { %1535 = vpow2.f32 %v561_v28  ;;  %v555_v30 = vsub.f32 %v501_v3, %v537_v29 }
 0x591   :  { %v565_v32 = vmul.f32 1.442695, %v555_v30 }
 0x592   :  { %v543_v33 = vpop.xlane.xlu1 %542  ;;  %v540_v34 = vpop.xlane.xlu0 %539 }
 0x593   :  { %1537 = vpow2.f32 %v565_v32  ;;  %v557_v37 = vsub.f32 %v511_v8, %v543_v33  ;;  %v556_v38 = vsub.f32 %v506_v5, %v540_v34 }
 0x595   :  { %v569_v39 = vmul.f32 1.442695, %v557_v37  ;;  %v567_v40 = vmul.f32 1.442695, %v556_v38 }
 0x596   :  { %v549_v41 = vpop.xlane.xlu1 %548  ;;  %v546_v31 = vpop.xlane.xlu0 %545 }
 0x597   :  { %1539 = vpow2.f32 %v569_v39  ;;  %v558_v43 = vsub.f32 %v516_v13, %v546_v31  ;;  %v559_v48 = vsub.f32 %v521_v18, %v549_v41 }
 0x598   :  { %v1534_v44 = vpop.eup %1533  ;;  %1541 = vpow2.f32 %v567_v40 }
 0x599   :  { %v1536_v45 = vpop.eup %1535  ;;  %v571_v46 = vmul.f32 1.442695, %v558_v43  ;;  %v580_v47 = vsel %vm133_vm0, %v1534_v44, 0.0  ;;  %v573_v58 = vmul.f32 1.442695, %v559_v48  ;;  %v54_v48 = vld [vmem:[#allocation5 + $0x60] sm:$0xff] }
 0x59a   :  { %v1507_v49 = vpop.permute.xlu1 %1506  ;;  %581 = vadd.xlane.f32.xlu0 %v580_v47  ;;  %v552_v50 = vpop.xlane.xlu0 %551  ;;  %v577_v51 = vsel %vm133_vm0, %v1536_v45, 0.0 }
 0x59b   :  { %v1509_v52 = vunpack.i.h.bf16 %v1507_v49  ;;  %v1508_v53 = vunpack.i.l.bf16 %v1507_v49  ;;  %v560_v54 = vsub.f32 %v526_v19, %v552_v50  ;;  %578 = vadd.xlane.f32.xlu1 %v577_v51  ;;  %1543 = vpow2.f32 %v571_v46  ;;  %v55_v49 = vld [vmem:[#allocation5 + $0x68] sm:$0xff]  ;;  %v75_v51 = vld [vmem:[#allocation5 + $0xd0] sm:$0xff] }
 0x59c   :  { %v1438_v50 = vpack.c.bf16 %v55_v49, %v54_v48  ;;  %1352 = vmatprep.mubr.msk.f32.mxu0 %vm133_vm0, %v75_v51 }
 0x59d   :  { %v1538_v55 = vpop.eup %1537  ;;  %v1422_v56 = vpack.c.bf16 %v1509_v52, %v1508_v53  ;;  %v575_v57 = vmul.f32 1.442695, %v560_v54  ;;  %v76_v52 = vld [vmem:[#allocation5 + $0xd8] sm:$0xff]  ;;  %v56_v53 = vld [vmem:[#allocation5 + $0x70] sm:$0xff] }
 0x59e   :  { %v583_v59 = vsel %vm133_vm0, %v1538_v55, 0.0  ;;  %v57_v54 = vld [vmem:[#allocation5 + $0x78] sm:$0xff] }
 0x59f   :  { %1545 = vpow2.f32 %v575_v57  ;;  %1423 = vmatprep.subr.bf16.mxu1 %v1422_v56  ;;  %584 = vadd.xlane.f32.xlu1 %v583_v59 }
 0x5a0   :  { %1425 = vmatpush3.bf16.msra.mxu1 %v1422_v56  ;;  %1547 = vpow2.f32 %v573_v58 }
 0x5a1   :  { %v1540_v60 = vpop.eup %1539 }
 0x5a2   :  { %v1542_v61 = vpop.eup %1541  ;;  %v589_v62 = vsel %vm133_vm0, %v1540_v60, 0.0 }
 0x5a3   :  { %590 = vadd.xlane.f32.xlu1 %v589_v62  ;;  %v586_v63 = vsel %vm133_vm0, %v1542_v61, 0.0 }
 0x5a4   :  { %587 = vadd.xlane.f32.xlu0 %v586_v63 }
 0x5a5   :  { %v1544_v2 = vpop.eup %1543 }
 0x5a6   :  { %v592_v3 = vsel %vm133_vm0, %v1544_v2, 0.0 }
 0x5a8   :  { %593 = vadd.xlane.f32.xlu0 %v592_v3 }
 0x5a9   :  { %v1813_v4 = vpop.eup %1545 }
 0x5aa   :  { %v598_v5 = vsel %vm133_vm0, %v1813_v4, 0.0  ;;  %v1548_v6 = vpop.eup %1547 }
 0x5ab   :  { %v595_v7 = vsel %vm133_vm0, %v1548_v6, 0.0 }
 0x5ac   :  { %599 = vadd.xlane.f32.xlu0 %v598_v5 }
 0x5b0   :  { %596 = vadd.xlane.f32.xlu0 %v595_v7 }
 0x5b4   :  { %1516 = vrot.lane.b32.xlu1 %v1774_v42, %s1645_s6 }
 0x5b8   :  { %1521 = vrot.lane.b32.xlu1 %v1766_v35, %s1645_s6 }
 0x5c6   :  { %1511 = vrot.lane.b32.xlu0 %v1768_v36, %s1645_s6 }
 0x627   :  { %v582_v9 = vpop.xlane.xlu0 %581 }
 0x628   :  { %1549 = vrcp.f32 %v582_v9  ;;  %v579_v10 = vpop.xlane.xlu1 %578 }
 0x629   :  { %1551 = vrcp.f32 %v579_v10 }
 0x62c   :  { %v585_v8 = vpop.xlane.xlu1 %584 }
 0x62d   :  { %1553 = vrcp.f32 %v585_v8 }
 0x630   :  { %v591_v11 = vpop.xlane.xlu1 %590 }
 0x631   :  { %v588_v13 = vpop.xlane.xlu0 %587 }
 0x632   :  { %v1550_v12 = vpop.eup %1549  ;;  %1555 = vrcp.f32 %v588_v13  ;;  %v79_v13 = vld [vmem:[#allocation5 + $0xf0] sm:$0xff] }
 0x633   :  { %v1552_v14 = vpop.eup %1551  ;;  %v604_v15 = vmul.f32 %v1550_v12, %v1534_v44  ;;  %1557 = vrcp.f32 %v591_v11  ;;  %v80_v12 = vld [vmem:[#allocation5 + $0xf8] sm:$0xff] }
 0x634   :  { %v602_v42 = vmul.f32 %v1552_v14, %v1536_v45  ;;  %v1517_v19 = vpop.permute.xlu1 %1516 }
 0x635   :  { %v594_v16 = vpop.xlane.xlu0 %593  ;;  %v1519_v29 = vunpack.i.h.bf16 %v1517_v19  ;;  %v1518_v30 = vunpack.i.l.bf16 %v1517_v19 }
 0x636   :  { %1559 = vrcp.f32 %v594_v16  ;;  %1313 = vmatprep.mubr.msk.f32.mxu1 %vm133_vm0, %v602_v42  ;;  %v1446_v35 = vpack.c.bf16 %v604_v15, %v602_v42 }
 0x637   :  { %v1554_v17 = vpop.eup %1553  ;;  %v1430_v40 = vpack.c.bf16 %v1519_v29, %v1518_v30 }
 0x638   :  { %1447 = vmatprep.subr.bf16.mxu0 %v1446_v35  ;;  %v606_v21 = vmul.f32 %v1554_v17, %v1538_v55  ;;  %v1522_v34 = vpop.permute.xlu1 %1521  ;;  %v1442_v55 = vpack.c.bf16 %v57_v54, %v56_v53  ;;  %v81_v17 = vld [vmem:[#allocation5 + $0x100] sm:$0xff] }
 0x639   :  { %v600_v36 = vpop.xlane.xlu0 %599  ;;  %1449 = vmatpush3.bf16.msra.mxu0 %v1446_v35  ;;  %v1524_v41 = vunpack.i.h.bf16 %v1522_v34  ;;  %v1523_v31 = vunpack.i.l.bf16 %v1522_v34  ;;  %v1466_v35 = vpack.c.bf16 %v80_v12, %v79_v13  ;;  %v1159_v54 = vld [vmem:[#allocation5 + $0x87] ss:$0 sm:$0xff] }
 0x63a   :  { %1561 = vrcp.f32 %v600_v36 }
 0x63b   :  { %v1434_v46 = vpack.c.bf16 %v1524_v41, %v1523_v31 }
 0x63c   :  { %v1556_v18 = vpop.eup %1555 }
 0x63d   :  { %v597_v20 = vpop.xlane.xlu0 %596  ;;  %v608_v22 = vmul.f32 %v1556_v18, %v1542_v61  ;;  %v1558_v23 = vpop.eup %1557  ;;  %v78_v61 = vld [vmem:[#allocation5 + $0xe8] sm:$0xff] }
 0x63e   :  { %1563 = vrcp.f32 %v597_v20  ;;  %v610_v27 = vmul.f32 %v1558_v23, %v1540_v60  ;;  %v77_v60 = vld [vmem:[#allocation5 + $0xe0] sm:$0xff]  ;;  %v82_v18 = vld [vmem:[#allocation5 + $0x108] sm:$0xff]  ;;  %v83_v20 = vld [vmem:[#allocation5 + $0x110] sm:$0xff] }
 0x63f   :  { %v1450_v24 = vpack.c.bf16 %v608_v22, %v606_v21  ;;  %v1462_v62 = vpack.c.bf16 %v78_v61, %v77_v60  ;;  %v1470_v19 = vpack.c.bf16 %v82_v18, %v81_v17 }
 0x640   :  { %v1560_v25 = vpop.eup %1559 }
 0x641   :  { %1451 = vmatprep.subr.bf16.mxu0 %v1450_v24  ;;  %v1512_v26 = vpop.permute.xlu0 %1511  ;;  %v612_v28 = vmul.f32 %v1560_v25, %v1544_v2  ;;  %v1156_v25 = vld [vmem:[#allocation5 + $0x86] ss:$0 sm:$0xff] }
 0x642   :  { %v1514_v32 = vunpack.i.h.bf16 %v1512_v26  ;;  %v1513_v33 = vunpack.i.l.bf16 %v1512_v26  ;;  %1453 = vmatpush3.bf16.msra.mxu0 %v1450_v24 }
 0x643   :  { %v1454_v37 = vpack.c.bf16 %v612_v28, %v610_v27 }
 0x644   :  { %v1426_v38 = vpack.c.bf16 %v1514_v32, %v1513_v33  ;;  %v1562_v39 = vpop.eup %1561 }
 0x645   :  { %1455 = vmatprep.subr.bf16.mxu0 %v1454_v37  ;;  %v616_v45 = vmul.f32 %v1562_v39, %v1813_v4 }
 0x646   :  { %1427 = vmatprep.subr.bf16.mxu1 %v1426_v38  ;;  %1457 = vmatpush3.bf16.msra.mxu0 %v1454_v37 }
 0x647   :  { %1429 = vmatpush3.bf16.msra.mxu1 %v1426_v38 }
 0x648   :  { %v1564_v43 = vpop.eup %1563  ;;  %1431 = vmatprep.subr.bf16.mxu1 %v1430_v40 }
 0x649   :  { %v614_v44 = vmul.f32 %v1564_v43, %v1548_v6 }
 0x64b   :  { %1433 = vmatpush3.bf16.msra.mxu1 %v1430_v40  ;;  %v1458_v47 = vpack.c.bf16 %v616_v45, %v614_v44 }
 0x64c   :  { %1435 = vmatprep.subr.bf16.mxu1 %v1434_v46 }
 0x64d   :  { %1459 = vmatprep.subr.bf16.mxu0 %v1458_v47 }
 0x64e   :  { %1461 = vmatpush3.bf16.msra.mxu0 %v1458_v47 }
 0x64f   :  { %1437 = vmatpush3.bf16.msra.mxu1 %v1434_v46 }
 0x650   :  { %1439 = vmatprep.subr.bf16.mxu1 %v1438_v50 }
 0x651   :  { %1353 = vmatmul.mubr.msk.f32.vlgmr.msra.gmra.mrb[10].mxu0 %vm133_vm0, %v76_v52 }
 0x652   :  { %1314 = vmatmul.mubr.msk.f32.vlgmr.msra.gmra.mrb[2].mxu1 %vm133_vm0, %v604_v15 }
 0x653   :  { %1316 = vmatprep.mubr.msk.f32.mxu1 %vm133_vm0, %v606_v21  ;;  %1441 = vmatpush3.bf16.msra.mxu1 %v1438_v50  ;;  %v84_v21 = vld [vmem:[#allocation5 + $0x118] sm:$0xff] }
 0x654   :  { %1443 = vmatprep.subr.bf16.mxu1 %v1442_v55 }
 0x656   :  { %1317 = vmatmul.mubr.msk.f32.gmra.mrb[4].mxu1 %vm133_vm0, %v608_v22  ;;  %v1474_v22 = vpack.c.bf16 %v84_v21, %v83_v20 }
 0x657   :  { %1319 = vmatprep.mubr.msk.f32.mxu1 %vm133_vm0, %v610_v27  ;;  %1445 = vmatpush3.bf16.msra.mxu1 %v1442_v55 }
 0x658   :  { %1463 = vmatprep.subr.bf16.mxu1 %v1462_v62 }
 0x65a   :  { %1320 = vmatmul.mubr.msk.f32.gmra.mrb[6].mxu1 %vm133_vm0, %v612_v28 }
 0x65b   :  { %1322 = vmatprep.mubr.msk.f32.mxu1 %vm133_vm0, %v614_v44 }
 0x65e   :  { %1323 = vmatmul.mubr.msk.f32.gmra.mrb[8].mxu1 %vm133_vm0, %v616_v45 }
 0x724   :  { %v1354_v23 = vpop.f32.mrb[10].mxu0 }
 0x725   :  { %v1315_v56 = vpop.f32.mrb[2].mxu1  ;;  %v999_v24 = vpop.f32.mrb[11].mxu0 }
 0x726   :  { %v731_v57 = vpop.f32.mrb[3].mxu1 }
 0x729   :  { %v1318_v58 = vpop.f32.mrb[4].mxu1 }
 0x72a   :  { %774 = vrot.lane.b32.xlu1 %v1318_v58, %s1643_s20  ;;  %v741_v59 = vpop.f32.mrb[5].mxu1 }
 0x72d   :  { %v1321_v63 = vpop.f32.mrb[6].mxu1 }
 0x72e   :  { %772 = vrot.lane.b32.xlu1 %v741_v59, %s1643_s20  ;;  %v751_v2 = vpop.f32.mrb[7].mxu1 }
 0x72f   :  { %780 = vrot.lane.b32.xlu0 %v751_v2, %s1650_s10 }
 0x731   :  { %v1324_v3 = vpop.f32.mrb[8].mxu1 }
 0x732   :  { %782 = vrot.lane.b32.xlu1 %v1321_v63, %s1650_s10  ;;  %v761_v4 = vpop.f32.mrb[9].mxu1 }
 0x733   :  { %788 = vrot.lane.b32.xlu0 %v761_v4, %s1651_s11 }
 0x736   :  { %790 = vrot.lane.b32.xlu1 %v1324_v3, %s1651_s11 }
 0x79c   :  { %v775_v5 = vpop.permute.xlu1 %774 }
 0x79d   :  { %v795_v15 = vsel %vm391_vm2, %v1315_v56, %v775_v5  ;;  %v1160_v56 = vld [vmem:[#allocation5 + $0x88] ss:$0 sm:$0xff] }
 0x7a0   :  { %v773_v6 = vpop.permute.xlu1 %772 }
 0x7a1   :  { %v781_v7 = vpop.permute.xlu0 %780  ;;  %v794_v9 = vsel %vm391_vm2, %v731_v57, %v773_v6 }
 0x7a2   :  { %v797_v8 = vsel %vm796_vm4, %v794_v9, %v781_v7 }
 0x7a4   :  { %v783_v10 = vpop.permute.xlu1 %782 }
 0x7a5   :  { %v789_v11 = vpop.permute.xlu0 %788  ;;  %v798_v42 = vsel %vm796_vm4, %v795_v15, %v783_v10 }
 0x7a6   :  { %v800_v14 = vsel %vm799_vm5, %v797_v8, %v789_v11 }
 0x7a7   :  { %1333 = vmatprep.mubr.msk.f32.mxu1 %vm85_vm1, %v800_v14 }
 0x7a8   :  { %v791_v16 = vpop.permute.xlu1 %790 }
 0x7a9   :  { %v801_v36 = vsel %vm799_vm5, %v798_v42, %v791_v16 }
 0x7aa   :  { %1334 = vmatmul.mubr.msk.f32.vlgmr.msra.gmra.mrb[10].mxu1 %vm85_vm1, %v801_v36 }
 0x7ab   :  { %1465 = vmatpush3.bf16.msra.mxu1 %v1462_v62  ;;  %1371 = vmatprep.mubr.msk.f32.mxu1 %vm133_vm0, %v999_v24 }
 0x7ac   :  { %1467 = vmatprep.subr.bf16.mxu1 %v1466_v35 }
 0x7af   :  { %1469 = vmatpush3.bf16.msra.mxu1 %v1466_v35 }
 0x7b0   :  { %1471 = vmatprep.subr.bf16.mxu1 %v1470_v19 }
 0x7b3   :  { %1473 = vmatpush3.bf16.msra.mxu1 %v1470_v19 }
 0x7b4   :  { %1475 = vmatprep.subr.bf16.mxu1 %v1474_v22 }
 0x7b7   :  { %1477 = vmatpush3.bf16.msra.mxu1 %v1474_v22 }
 0x7ba   :  { %1372 = vmatmul.mubr.msk.f32.vlgmr.msra.gmra.mrb[12].mxu1 %vm133_vm0, %v1354_v23 }
 0x87d   :  { %v1335_v26 = vpop.f32.mrb[10].mxu1 }
 0x87e   :  { %v884_v27 = vadd.f32 %v1335_v26, %v1156_v25  ;;  %v878_v28 = vpop.f32.mrb[11].mxu1 }
 0x87f   :  { %v879_v29 = vadd.f32 %v1156_v25, %v878_v28 }
 0x880   :  { %v890_v30 = vsel %vm85_vm1, %v884_v27, 0.0 }
 0x881   :  { %891 = vadd.xlane.f32.xlu1 %v890_v30  ;;  %v887_v32 = vsel %vm85_vm1, %v879_v29, 0.0 }
 0x882   :  { %888 = vadd.xlane.f32.xlu0 %v887_v32 }
 0x88d   :  { %v1373_v33 = vpop.f32.mrb[12].mxu1 }
 0x88e   :  { %v1080_v34 = vpop.f32.mrb[13].mxu1 }
 0x892   :  { %1091 = vrot.lane.b32.xlu1 %v1080_v34, %s1646_s1 }
 0x90e   :  { %v892_v37 = vpop.xlane.xlu1 %891 }
 0x90f   :  { %v894_v38 = vmul.f32 0.03125, %v892_v37  ;;  %v889_v39 = vpop.xlane.xlu0 %888 }
 0x910   :  { %v893_v40 = vmul.f32 0.03125, %v889_v39 }
 0x911   :  { %v896_v41 = vsub.f32 %v884_v27, %v894_v38 }
 0x912   :  { %v895_v31 = vsub.f32 %v879_v29, %v893_v40  ;;  %v1092_v61 = vpop.permute.xlu1 %1091 }
 0x913   :  { %v898_v45 = vmul.f32 %v896_v41, %v896_v41 }
 0x914   :  { %v897_v43 = vmul.f32 %v895_v31, %v895_v31 }
 0x915   :  { %v902_v46 = vsel %vm85_vm1, %v898_v45, 0.0 }
 0x916   :  { %v899_v44 = vsel %vm85_vm1, %v897_v43, 0.0 }
 0x917   :  { %900 = vadd.xlane.f32.xlu0 %v899_v44 }
 0x91b   :  { %903 = vadd.xlane.f32.xlu0 %v902_v46 }
 0x931   :  { %1093 = vrot.lane.b32.xlu0 %v1373_v33, %s1646_s1 }
 0x9a4   :  { %v901_v47 = vpop.xlane.xlu0 %900 }
 0x9a5   :  { %v905_v48 = vmul.f32 0.03125, %v901_v47 }
 0x9a7   :  { %v907_v49 = vadd.f32 1e-05, %v905_v48 }
 0x9a8   :  { %v904_v50 = vpop.xlane.xlu0 %903 }
 0x9a9   :  { %1565 = vrsqrt.f32 %v907_v49  ;;  %v906_v51 = vmul.f32 0.03125, %v904_v50 }
 0x9ab   :  { %v908_v52 = vadd.f32 1e-05, %v906_v51 }
 0x9ac   :  { %v1094_v6 = vpop.permute.xlu0 %1093 }
 0x9ad   :  { %1567 = vrsqrt.f32 %v908_v52 }
 0x9b3   :  { %v1566_v53 = vpop.eup %1565 }
 0x9b4   :  { %v911_v55 = vmul.f32 %v1566_v53, %v895_v31 }
 0x9b6   :  { %v917_v57 = vmul.f32 %v1159_v54, %v911_v55 }
 0x9b7   :  { %v1568_v58 = vpop.eup %1567 }
 0x9b8   :  { %v923_v59 = vadd.f32 %v1160_v56, %v917_v57  ;;  %v912_v60 = vmul.f32 %v1568_v58, %v896_v41 }
 0x9ba   :  { %v925_v62 = vadd.f32 %v923_v59, %v1698_v0  ;;  %v918_v63 = vmul.f32 %v1159_v54, %v912_v60 }
 0x9bc   :  { %v1097_v2 = vsel %vm85_vm1, %v925_v62, %v1092_v61  ;;  %v924_v3 = vadd.f32 %v1160_v56, %v918_v63 }
 0x9bd   :  { %v1100_v4 = vsel %vm1099_vm6, %v1097_v2, 0.0 }
 0x9be   :  { %1102 = vst [vmem:[#allocation7] sm:$0xff] %v1100_v4  ;;  %v926_v5 = vadd.f32 %v924_v3, %v1702_v1 }
 0x9c0   :  { %v1098_v7 = vsel %vm85_vm1, %v926_v5, %v1094_v6 }
 0x9c1   :  { %v1101_v9 = vsel %vm1099_vm6, %v1098_v7, 0.0 }
 0x9c2   :  { %1103 = vst [vmem:[#allocation7 + $0x8] sm:$0xff] %v1101_v9 }
 0x9c3   :  { %1624 = shalt.err (!%p1621_p6)
}
 0x9c4   :  { %s1625_s17 = scalar_lea.hbm %s1870_s2, 256 }
 0x9c5   :  { %p1626_p7 = scmp.ne.s32.totalorder %s1870_s2, %s1625_s17  ;;  %p1629_p8 = scmp.lt.u32.totalorder %s1625_s17, %s1870_s2 }
 0x9c7   :  { %p1631_p9 = pnand %p1629_p8, %p1626_p7 }
 0x9c9   :  { %1634 = shalt.err (!%p1631_p9)
}
 0x9ca   :  { %1115 = dma.vmem_to_hbm [thread:$0]  %s1110_s13, 256, %s1870_s2, [#allocation4], %s1642_s19, %s1642_s19, %s1643_s20  }
 0x9cb   :  { %1639 = dma.done.wait [#allocation4], 256  }
 0x9cc   :  { %1640 = vsyncadd [#allocation4], 4294967040 }
 0x9cd   :  { %1119 = vsyncpa [#allocation3], 1 }
 0x9ce   :  { %1120 = vsyncpa [#allocation6], 1 }
 0x9cf   :  { %1121 = vsyncpa [#allocation4], 1 }

</bundles_post_ra>
